<compile_context>
chip_gen: v6e
topology: v6e:2x2x1
jax: 0.10.0
libtpu: 0.0.40
codegen_flags: <defaults>
</compile_context>

<pallas_src>
import jax
import jax.numpy as jnp
from jax.experimental import pallas as pl
from jax.experimental.pallas import tpu as pltpu


def critic_kernel(s_ref, a_ref, w1s_ref, w1a_ref, b1_ref, w2_ref, b2_ref,
                  w3_ref, b3_ref, q_ref):
    # Layer 1: concat fused away -> two MXU matmuls accumulated in f32.
    # (state/action already arrive in the MXU operand dtype; no in-kernel cast.)
    h1 = (jnp.dot(s_ref[...], w1s_ref[...], preferred_element_type=jnp.float32)
          + jnp.dot(a_ref[...], w1a_ref[...], preferred_element_type=jnp.float32)
          + b1_ref[...])
    h1 = jnp.maximum(h1, 0.0)

    # Layer 2 (cast of the f32 activation to the MXU operand dtype is the only
    # in-kernel conversion; it is unavoidable since h1 is produced in f32).
    h2 = jnp.dot(h1.astype(w2_ref.dtype), w2_ref[...],
                 preferred_element_type=jnp.float32) + b2_ref[...]
    h2 = jnp.maximum(h2, 0.0)

    # Layer 3 (out_features == 1): VPU multiply + lane reduction keeps the
    # degenerate N=1 matmul off the MXU; b3 is a scalar living in SMEM.
    q_col = jnp.sum(h2 * w3_ref[...], axis=-1, keepdims=True) + b3_ref[0]  # (TB, 1)

    # Lane-dense store: one small XLU transpose (TB/128 vregs) -> (1, TB) row.
    q_ref[...] = q_col.T.astype(q_ref.dtype)


def _round_up(x, m):
    return (x + m - 1) // m * m


def critic_forward(state, action, params, *, compute_dtype=jnp.float32,
                   block_b=2048, min_pallas_batch=256):
    """Fused Critic forward.

    params: w1s [state_dim, H1], w1a [action_dim, H1], b1 [1, H1],
            w2 [H1, H2], b2 [1, H2], w3 [1, H2] (row), b3 [1].
    """
    B, Ds = state.shape
    Ba, Da = action.shape
    assert Ba == B
    H1 = params["w1s"].shape[1]
    H2 = params["w2"].shape[1]

    # Bias / final-row math stays f32 (VPU path, v5e-friendly).
    b1 = params["b1"].astype(jnp.float32)
    b2 = params["b2"].astype(jnp.float32)
    w3 = params["w3"].astype(jnp.float32)
    b3 = params["b3"].astype(jnp.float32)

    # MXU operands (weights AND activations) optionally bf16; casting the
    # activations here (upstream) halves the dominant input HBM stream instead
    # of burning VPU packs inside the kernel.
    w1s = params["w1s"].astype(compute_dtype)
    w1a = params["w1a"].astype(compute_dtype)
    w2 = params["w2"].astype(compute_dtype)
    s = state.astype(compute_dtype)
    a = action.astype(compute_dtype)

    if B < min_pallas_batch:
        # Small-batch fallback: launch + grid-step overhead dwarfs the work.
        h1 = jnp.maximum(
            jnp.dot(s, w1s, preferred_element_type=jnp.float32)
            + jnp.dot(a, w1a, preferred_element_type=jnp.float32) + b1, 0.0)
        h2 = jnp.maximum(
            jnp.dot(h1.astype(compute_dtype), w2,
                    preferred_element_type=jnp.float32) + b2, 0.0)
        return jnp.sum(h2 * w3, axis=-1, keepdims=True) + b3

    # Batch tile: multiple of 8 sublanes, at least 2 tiles (v7x megacore),
    # capped at block_b. Weights (~10 KB) stay VMEM-resident across tiles.
    block_b = max(8, block_b - block_b % 8)
    TB = max(8, min(_round_up(pl.cdiv(B, 2), 8), block_b))
    nb = pl.cdiv(B, TB)   # partial final block: OOB reads harmless, rows dropped

    batch_spec = lambda d: pl.BlockSpec((TB, d), lambda i: (i, 0))
    resident = lambda shape: pl.BlockSpec(shape, lambda i, n=len(shape): (0,) * n)

    q_slab = pl.pallas_call(
        critic_kernel,
        out_shape=jax.ShapeDtypeStruct((nb, 1, TB), jnp.float32),
        grid=(nb,),
        in_specs=[
            batch_spec(Ds),                                     # state tile
            batch_spec(Da),                                     # action tile
            resident((Ds, H1)),                                 # w1 (state part)
            resident((Da, H1)),                                 # w1 (action part)
            resident((1, H1)),                                  # b1
            resident((H1, H2)),                                 # w2
            resident((1, H2)),                                  # b2
            resident((1, H2)),                                  # w3 row
            pl.BlockSpec(memory_space=pltpu.MemorySpace.SMEM),  # b3 scalar
        ],
        # Lane-dense output slab: one (1, TB) row per batch tile.
        out_specs=pl.BlockSpec((None, 1, TB), lambda i: (i, 0, 0)),
        compiler_params=pltpu.CompilerParams(
            dimension_semantics=("parallel",)),
    )(s, a, w1s, w1a, b1, w2, b2, w3, b3)

    # Slab -> (B, 1); padded/garbage tail rows (if any) are discarded here.
    return q_slab.reshape(nb * TB)[:B].reshape(B, 1)


def init_params(key, state_dim, action_dim, hidden_size=(32, 32)):
    """Deterministic synthetic init (nn.Linear-style, transposed weights)."""
    h1, h2 = hidden_size
    num_inputs = state_dim + action_dim
    ks = jax.random.split(key, 6)

    def linear(kw, kb, fan_in, fan_out):
        bound = 1.0 / jnp.sqrt(fan_in)
        w = jax.random.uniform(kw, (fan_in, fan_out), jnp.float32, -bound, bound)
        b = jax.random.uniform(kb, (1, fan_out), jnp.float32, -bound, bound)
        return w, b

    w1, b1 = linear(ks[0], ks[1], num_inputs, h1)
    w2, b2 = linear(ks[2], ks[3], h1, h2)
    w3, b3 = linear(ks[4], ks[5], h2, 1)
    return {
        "w1s": w1[:state_dim],   # first-layer weight, state part
        "w1a": w1[state_dim:],   # first-layer weight, action part
        "b1": b1,
        "w2": w2, "b2": b2,
        "w3": w3.T,              # (1, h2) row for the lane reduction
        "b3": b3.reshape(-1),    # (1,) scalar -> SMEM in the kernel
    }


# TODO(synk): checkpoint save/load (os.path + torch.save) is host-side I/O with
# no kernel equivalent; omitted.

if __name__ == "__main__":
    key = jax.random.PRNGKey(0)
    k_state, k_action, k_params, k_state2, k_action2 = jax.random.split(key, 5)

    state_dim = 24
    action_dim = 8
    hidden_size = (32, 32)
    params = init_params(k_params, state_dim, action_dim, hidden_size)

    def reference(state, action):
        x = jnp.concatenate([state, action], axis=1)
        w1 = jnp.concatenate([params["w1s"], params["w1a"]], axis=0)
        h1 = jnp.maximum(x @ w1 + params["b1"], 0.0)
        h2 = jnp.maximum(h1 @ params["w2"] + params["b2"], 0.0)
        return h2 @ params["w3"].T + params["b3"]

    # --- Pallas path: B=401 -> TB=208, 2 "parallel" tiles, partial last block.
    B = 401
    state = jax.random.normal(k_state, (B, state_dim), jnp.float32)
    action = jax.random.normal(k_action, (B, action_dim), jnp.float32)

    q = jax.block_until_ready(critic_forward(state, action, params))
    q_ref = reference(state, action)
    assert q.shape == (B, 1)
    assert jnp.allclose(q, q_ref, atol=1e-4, rtol=1e-4)

    # bf16 MXU-operand path (activations + weights cast in the wrapper;
    # accumulation and all bias/ReLU/reduction math stay f32).
    q_bf16 = jax.block_until_ready(
        critic_forward(state, action, params, compute_dtype=jnp.bfloat16))
    assert jnp.allclose(q_bf16, q_ref, atol=2e-1, rtol=5e-2)

    # --- Small-batch fallback (B=8: launch overhead >> ~4 KFLOP/row of work).
    Bs = 8
    state_s = jax.random.normal(k_state2, (Bs, state_dim), jnp.float32)
    action_s = jax.random.normal(k_action2, (Bs, action_dim), jnp.float32)
    q_s = jax.block_until_ready(critic_forward(state_s, action_s, params))
    assert q_s.shape == (Bs, 1)
    assert jnp.allclose(q_s, reference(state_s, action_s), atol=1e-5, rtol=1e-5)

    print("KERNEL_OK")
</pallas_src>

<mosaic_0001>
module attributes {stable_mosaic.version = 11 : i64} {
  func.func @critic_kernel(%arg0: i32, %arg1: memref<208x24xf32, #tpu.memory_space<vmem>>, %arg2: memref<208x8xf32, #tpu.memory_space<vmem>>, %arg3: memref<24x32xf32, #tpu.memory_space<vmem>>, %arg4: memref<8x32xf32, #tpu.memory_space<vmem>>, %arg5: memref<1x32xf32, #tpu.memory_space<vmem>>, %arg6: memref<32x32xf32, #tpu.memory_space<vmem>>, %arg7: memref<1x32xf32, #tpu.memory_space<vmem>>, %arg8: memref<1x32xf32, #tpu.memory_space<vmem>>, %arg9: memref<1xf32, #tpu.memory_space<smem>>, %arg10: memref<1x1x208xf32, #tpu.memory_space<vmem>>) attributes {dimension_semantics = [#tpu.dimension_semantics<parallel>], iteration_bounds = array<i64: 2>, scalar_prefetch = 0 : i64, scratch_operands = 0 : i64, tpu.core_type = #tpu.core_type<tc>, window_params = [{transform_indices = @transform_0, window_bounds = array<i64: 208, 24>}, {transform_indices = @transform_1, window_bounds = array<i64: 208, 8>}, {pipeline_mode = #tpu.pipeline_mode<synchronous>, transform_indices = @transform_2, window_bounds = array<i64: 24, 32>}, {pipeline_mode = #tpu.pipeline_mode<synchronous>, transform_indices = @transform_3, window_bounds = array<i64: 8, 32>}, {pipeline_mode = #tpu.pipeline_mode<synchronous>, transform_indices = @transform_4, window_bounds = array<i64: 1, 32>}, {pipeline_mode = #tpu.pipeline_mode<synchronous>, transform_indices = @transform_5, window_bounds = array<i64: 32, 32>}, {pipeline_mode = #tpu.pipeline_mode<synchronous>, transform_indices = @transform_6, window_bounds = array<i64: 1, 32>}, {pipeline_mode = #tpu.pipeline_mode<synchronous>, transform_indices = @transform_7, window_bounds = array<i64: 1, 32>}, {transform_indices = @transform_8, window_bounds = array<i64: 1>}, {transform_indices = @transform_9, window_bounds = array<i64: 1, 1, 208>}]} {
    %c0 = arith.constant 0 : index
    %c0_0 = arith.constant 0 : index
    %0 = vector.load %arg1[%c0, %c0_0] : memref<208x24xf32, #tpu.memory_space<vmem>>, vector<208x24xf32>
    %c0_1 = arith.constant 0 : index
    %c0_2 = arith.constant 0 : index
    %1 = vector.load %arg3[%c0_1, %c0_2] : memref<24x32xf32, #tpu.memory_space<vmem>>, vector<24x32xf32>
    %cst = arith.constant dense<0.000000e+00> : vector<208x32xf32>
    %2 = tpu.matmul %0, %1, %cst {dimension_numbers = #tpu.dot_dimension_numbers<[1], [0], [0], [1], [0, 0, 1, 1], [], []>} : vector<208x24xf32>, vector<24x32xf32>, vector<208x32xf32> -> vector<208x32xf32>
    %c0_3 = arith.constant 0 : index
    %c0_4 = arith.constant 0 : index
    %3 = vector.load %arg2[%c0_3, %c0_4] : memref<208x8xf32, #tpu.memory_space<vmem>>, vector<208x8xf32>
    %c0_5 = arith.constant 0 : index
    %c0_6 = arith.constant 0 : index
    %4 = vector.load %arg4[%c0_5, %c0_6] : memref<8x32xf32, #tpu.memory_space<vmem>>, vector<8x32xf32>
    %cst_7 = arith.constant dense<0.000000e+00> : vector<208x32xf32>
    %5 = tpu.matmul %3, %4, %cst_7 {dimension_numbers = #tpu.dot_dimension_numbers<[1], [0], [0], [1], [0, 0, 1, 1], [], []>} : vector<208x8xf32>, vector<8x32xf32>, vector<208x32xf32> -> vector<208x32xf32>
    %6 = arith.addf %2, %5 : vector<208x32xf32>
    %c0_8 = arith.constant 0 : index
    %c0_9 = arith.constant 0 : index
    %7 = vector.load %arg5[%c0_8, %c0_9] : memref<1x32xf32, #tpu.memory_space<vmem>>, vector<1x32xf32>
    %8 = vector.broadcast %7 : vector<1x32xf32> to vector<208x32xf32>
    %9 = arith.addf %6, %8 : vector<208x32xf32>
    %cst_10 = arith.constant 0.000000e+00 : f32
    %10 = vector.broadcast %cst_10 : f32 to vector<208x32xf32>
    %11 = arith.maximumf %9, %10 : vector<208x32xf32>
    %c0_11 = arith.constant 0 : index
    %c0_12 = arith.constant 0 : index
    %12 = vector.load %arg6[%c0_11, %c0_12] : memref<32x32xf32, #tpu.memory_space<vmem>>, vector<32x32xf32>
    %cst_13 = arith.constant dense<0.000000e+00> : vector<208x32xf32>
    %13 = tpu.matmul %11, %12, %cst_13 {dimension_numbers = #tpu.dot_dimension_numbers<[1], [0], [0], [1], [0, 0, 1, 1], [], []>} : vector<208x32xf32>, vector<32x32xf32>, vector<208x32xf32> -> vector<208x32xf32>
    %c0_14 = arith.constant 0 : index
    %c0_15 = arith.constant 0 : index
    %14 = vector.load %arg7[%c0_14, %c0_15] : memref<1x32xf32, #tpu.memory_space<vmem>>, vector<1x32xf32>
    %15 = vector.broadcast %14 : vector<1x32xf32> to vector<208x32xf32>
    %16 = arith.addf %13, %15 : vector<208x32xf32>
    %cst_16 = arith.constant 0.000000e+00 : f32
    %17 = vector.broadcast %cst_16 : f32 to vector<208x32xf32>
    %18 = arith.maximumf %16, %17 : vector<208x32xf32>
    %c0_17 = arith.constant 0 : index
    %c0_18 = arith.constant 0 : index
    %19 = vector.load %arg8[%c0_17, %c0_18] : memref<1x32xf32, #tpu.memory_space<vmem>>, vector<1x32xf32>
    %20 = vector.broadcast %19 : vector<1x32xf32> to vector<208x32xf32>
    %21 = arith.mulf %18, %20 : vector<208x32xf32>
    %cst_19 = arith.constant dense<0.000000e+00> : vector<208xf32>
    %22 = vector.multi_reduction <add>, %21, %cst_19 [1] : vector<208x32xf32> to vector<208xf32>
    %23 = vector.shape_cast %22 : vector<208xf32> to vector<208x1xf32>
    %c0_20 = arith.constant 0 : index
    %24 = memref.load %arg9[%c0_20] : memref<1xf32, #tpu.memory_space<smem>>
    %25 = vector.broadcast %24 : f32 to vector<208x1xf32>
    %26 = arith.addf %23, %25 : vector<208x1xf32>
    %27 = tpu.transpose %26, [1, 0] : vector<208x1xf32> -> vector<1x208xf32>
    %c0_21 = arith.constant 0 : index
    %c0_22 = arith.constant 0 : index
    %c0_23 = arith.constant 0 : index
    %28 = vector.load %arg10[%c0_21, %c0_22, %c0_23] : memref<1x1x208xf32, #tpu.memory_space<vmem>>, vector<1x1x208xf32>
    %29 = vector.shape_cast %28 : vector<1x1x208xf32> to vector<1x208xf32>
    %30 = vector.shape_cast %27 : vector<1x208xf32> to vector<1x1x208xf32>
    tpu.vector_store %arg10[%c0_21, %c0_22, %c0_23], %30 {strides = array<i32>} : memref<1x1x208xf32, #tpu.memory_space<vmem>>, vector<1x1x208xf32>,
    return
  }
  func.func @transform_0(%arg0: i32) -> (i32, i32) {
    %c0_i32 = arith.constant 0 : i32
    %c0_i32_0 = arith.constant 0 : i32
    return %arg0, %c0_i32 : i32, i32
  }
  func.func @transform_1(%arg0: i32) -> (i32, i32) {
    %c0_i32 = arith.constant 0 : i32
    %c0_i32_0 = arith.constant 0 : i32
    return %arg0, %c0_i32 : i32, i32
  }
  func.func @transform_2(%arg0: i32) -> (i32, i32) {
    %c0_i32 = arith.constant 0 : i32
    %c0_i32_0 = arith.constant 0 : i32
    %c0_i32_1 = arith.constant 0 : i32
    return %c0_i32, %c0_i32_0 : i32, i32
  }
  func.func @transform_3(%arg0: i32) -> (i32, i32) {
    %c0_i32 = arith.constant 0 : i32
    %c0_i32_0 = arith.constant 0 : i32
    %c0_i32_1 = arith.constant 0 : i32
    return %c0_i32, %c0_i32_0 : i32, i32
  }
  func.func @transform_4(%arg0: i32) -> (i32, i32) {
    %c0_i32 = arith.constant 0 : i32
    %c0_i32_0 = arith.constant 0 : i32
    %c0_i32_1 = arith.constant 0 : i32
    return %c0_i32, %c0_i32_0 : i32, i32
  }
  func.func @transform_5(%arg0: i32) -> (i32, i32) {
    %c0_i32 = arith.constant 0 : i32
    %c0_i32_0 = arith.constant 0 : i32
    %c0_i32_1 = arith.constant 0 : i32
    return %c0_i32, %c0_i32_0 : i32, i32
  }
  func.func @transform_6(%arg0: i32) -> (i32, i32) {
    %c0_i32 = arith.constant 0 : i32
    %c0_i32_0 = arith.constant 0 : i32
    %c0_i32_1 = arith.constant 0 : i32
    return %c0_i32, %c0_i32_0 : i32, i32
  }
  func.func @transform_7(%arg0: i32) -> (i32, i32) {
    %c0_i32 = arith.constant 0 : i32
    %c0_i32_0 = arith.constant 0 : i32
    %c0_i32_1 = arith.constant 0 : i32
    return %c0_i32, %c0_i32_0 : i32, i32
  }
  func.func @transform_8(%arg0: i32) -> i32 {
    %c0_i32 = arith.constant 0 : i32
    %c0_i32_0 = arith.constant 0 : i32
    return %c0_i32 : i32
  }
  func.func @transform_9(%arg0: i32) -> (i32, i32, i32) {
    %c0_i32 = arith.constant 0 : i32
    %c0_i32_0 = arith.constant 0 : i32
    %c0_i32_1 = arith.constant 0 : i32
    return %arg0, %c0_i32, %c0_i32_0 : i32, i32, i32
  }
}

</mosaic_0001>

<bundles_post_ra>
// kernel: tpu_custom_call.1
= control target key start
LH: loop header
LB: loop body
LE: loop exit
PB: predicated region body
PF: predicated region fallthrough
CT: control target
= control target key end

     0   :  { %s2592_s0 = inlined_call_operand.vmem [shape: f32[401,24], index: 0, kind: input, shape index: {}]   ;;  %s2593_s1 = inlined_call_operand.vmem [shape: f32[401,8], index: 1, kind: input, shape index: {}]   ;;  %s2594_s2 = inlined_call_operand.vmem [shape: f32[24,32], index: 2, kind: input, shape index: {}]   ;;  %s2595_s3 = inlined_call_operand.vmem [shape: f32[8,32], index: 3, kind: input, shape index: {}]   ;;  %s2596_s4 = inlined_call_operand.vmem [shape: f32[1,32], index: 4, kind: input, shape index: {}]   ;;  %s2597_s5 = inlined_call_operand.vmem [shape: f32[32,32], index: 5, kind: input, shape index: {}]   ;;  %s2598_s6 = inlined_call_operand.vmem [shape: f32[1,32], index: 6, kind: input, shape index: {}]   ;;  %s2599_s7 = inlined_call_operand.vmem [shape: f32[1,32], index: 7, kind: input, shape index: {}]   ;;  %s2600_s8 = inlined_call_operand.<no memory space> [shape: f32[1], index: 8, kind: input, shape index: {}]   ;;  %s2601_s9 = inlined_call_operand.hbm [shape: f32[2,1,208], index: 9, kind: output, shape index: {}]  }
   0x1   :  { %14 = sst [smem:[#allocation2]] %s2600_s8 }
   0x2   :  { %15 = vsyncpa [#allocation4], 0 }
   0x3   :  { %17 = vsyncpa [#allocation4 + $0x1], 0  ;;  %s2155_s11 = smov 0   ;;  %s2157_s12 = smov 0  }
   0x4   :  { %s2159_s13 = smov 0   ;;  %s2161_s14 = smov 0  }
   0x5 LB: > { %s2176_s8 = sadd.s32 4294967295, %s2098_s14   ;;  %s1682_s15 = sadd.s32 4294967294, %s2098_s14   ;;  %s2098_s14 = sphi %s2161_s14, %s2607_s14   ;;  %s2094_s13 = sphi %s2159_s13, %s2606_s13   ;;  %s2090_s12 = sphi %s2157_s12, %s2605_s12   ;;  %s2086_s11 = sphi %s2155_s11, %s2604_s11  }
   0x6   : > { %s2180_s16 = sadd.s32 1, %s2098_s14   ;;  %s229_s17 = sadd.s32 1, %s2094_s13 }
   0x7   : > { %s226_s18 = ssub.s32 %s2098_s14, %s2180_s16  ;;  %p239_p0 = scmp.ne.s32.totalorder %s2094_s13, %s2090_s12 }
   0x8   : > { %p227_p1 = scmp.eq.s32.totalorder %s226_s18, 0  ;;  %p240_p2 = scmp.eq.s32.totalorder %s2176_s8, 1 }
   0x9   : > { %p245_p3 = scmp.ne.s32.totalorder %s2090_s12, %s2086_s11  ;;  %p246_p4 = scmp.eq.s32.totalorder %s1682_s15, 1 }
   0xa   : > { %s2191_s19 = scalar_select %p227_p1, %s2094_s13, %s229_s17  }
   0xb   : > { %p2193_p5 = por %p240_p2, %p239_p0  ;;  %p2197_p6 = por %p246_p4, %p245_p3 }
   0xc   : > { %p1685_p7 = scmp.ge.s32.totalorder %s2098_s14, 1  ;;  %p319_p8 = scmp.lt.s32.totalorder %s2098_s14, 3 }
   0xe   : > { %p320_p9 = pnand %p1685_p7, %p319_p8 }
   0xf   : > { %s368_s24 = smul.u32 (!%p320_p9), 26, %s2176_s8  ;;  %s1481_s26 = sld [smem:[#allocation2]] (!%p320_p9) }
  0x10   : > { %323 = sbr.rel (%p320_p9) target bundleno = 772 (0x304), region = 56  ;;  %s1775_s29 = sshll.u32 (!%p320_p9), %s2176_s8, 5 }
  0x11   : > { %p373_p10 = scmp.lt.s32.totalorder (!%p320_p9), %s368_s24, 50  ;;  %s1609_s18 = scalar_lea.hbm (!%p320_p9), %s2601_s9, %s1775_s29 }
  0x15   : > { %v451_v0 = vld [vmem:[%s2595_s3] sm:$0xff]  ;;  %v424_v1 = vld [vmem:[%s2594_s2 + $0x10] sm:$0xff]  ;;  %s2609_s24 = smov (!%p373_p10, %s368_s24), 50  ;;  %vm452_vm0 = vcmask 64512   ;;  %v423_v5 = vld [vmem:[%s2594_s2 + $0x8] sm:$0xff]  ;;  %vm726_vm1 = vcmask 195584  }
  0x16   : > { %1995 = vmatprep.subr.mxu1 %v451_v0  ;;  %1862 = vmatprep.subr.mxu0 %v451_v0  ;;  %s1687_s27 = sshll.u32 %s2609_s24, 3  ;;  %v422_v7 = vld [vmem:[%s2594_s2] sm:$0xff]  ;;  %v1062_v55 = vld [vmem:[%s2597_s5 + $0x18] sm:$0xff]  ;;  %v1061_v57 = vld [vmem:[%s2597_s5 + $0x10] sm:$0xff]  ;;  %vm1070_vm2 = vcmask 261120  }
  0x17   : > { %1996 = vmatpush3.msra.mxu1 %v451_v0  ;;  %1863 = vmatpush3.msra.mxu0 %v451_v0  ;;  %s2218_s30 = scalar_lea.vmem %s2593_s1, %s1687_s27  ;;  %s2264_s25 = scalar_lea.vmem %s2592_s0, %s1687_s27  ;;  %v1060_v58 = vld [vmem:[%s2597_s5 + $0x8] sm:$0xff]  ;;  %v1059_v59 = vld [vmem:[%s2597_s5] sm:$0xff] }
  0x18   : > { %1903 = vmatprep.subr.mxu1 %v424_v1  ;;  %v439_v2 = vld [vmem:[%s2218_s30 + $0x70] sm:$0xff]  ;;  %v440_v3 = vld [vmem:[%s2218_s30 + $0x78] sm:$0xff]  ;;  %v441_v4 = vld [vmem:[%s2218_s30 + $0x80] sm:$0xff]  ;;  %1948 = vmatprep.subr.mxu0 %v1062_v55  ;;  %s365_s27 = sand.u32 1, %s2090_s12  }
  0x19   : > { %1885 = vmatprep.mubr.msk.f32.mxu1 %vm452_vm0, %v439_v2  ;;  %v442_v6 = vld [vmem:[%s2218_s30 + $0x88] sm:$0xff]  ;;  %v443_v8 = vld [vmem:[%s2218_s30 + $0x90] sm:$0xff]  ;;  %v425_v9 = vld [vmem:[%s2218_s30] sm:$0xff]  ;;  %s1686_s28 = sshll.u32 %s365_s27, 1  ;;  %s1597_s22 = scalar_lea.sflag [#allocation4], %s365_s27 }
  0x1a   : > { %1886 = vmatmul.mubr.msk.f32.vlgmr.msra.gmra.mxu1 %vm452_vm0, %v440_v3  ;;  %1864 = vmatprep.mubr.msk.f32.mxu0 %vm452_vm0, %v425_v9  ;;  %v426_v10 = vld [vmem:[%s2218_s30 + $0x8] sm:$0xff]  ;;  %v427_v11 = vld [vmem:[%s2218_s30 + $0x10] sm:$0xff]  ;;  %v444_v12 = vld [vmem:[%s2218_s30 + $0x98] sm:$0xff] }
  0x1b   : > { %1904 = vmatpush3.msra.mxu1 %v424_v1  ;;  %1888 = vmatprep.mubr.msk.f32.mxu1 %vm452_vm0, %v441_v4  ;;  %v445_v13 = vld [vmem:[%s2218_s30 + $0xa0] sm:$0xff]  ;;  %v428_v14 = vld [vmem:[%s2218_s30 + $0x18] sm:$0xff]  ;;  %v446_v16 = vld [vmem:[%s2218_s30 + $0xa8] sm:$0xff] }
  0x1c   : > { %1905 = vmatprep.subr.mxu1 %v423_v5  ;;  %1865 = vmatmul.mubr.msk.f32.vlgmr.msra.gmra.mxu0 %vm452_vm0, %v426_v10  ;;  %v429_v15 = vld [vmem:[%s2218_s30 + $0x20] sm:$0xff]  ;;  %v447_v17 = vld [vmem:[%s2218_s30 + $0xb0] sm:$0xff]  ;;  %v430_v18 = vld [vmem:[%s2218_s30 + $0x28] sm:$0xff] }
  0x1d   : > { %1906 = vmatpush3.msra.mxu1 %v423_v5  ;;  %1867 = vmatprep.mubr.msk.f32.mxu0 %vm452_vm0, %v427_v11  ;;  %v431_v19 = vld [vmem:[%s2218_s30 + $0x30] sm:$0xff]  ;;  %v448_v20 = vld [vmem:[%s2218_s30 + $0xb8] sm:$0xff]  ;;  %v449_v21 = vld [vmem:[%s2218_s30 + $0xc0] sm:$0xff] }
  0x1e   : > { %1889 = vmatmul.mubr.msk.f32.gmra.mxu1 %vm452_vm0, %v442_v6  ;;  %1907 = vmatprep.subr.mxu1 %v422_v7  ;;  %v432_v22 = vld [vmem:[%s2218_s30 + $0x38] sm:$0xff]  ;;  %v433_v23 = vld [vmem:[%s2218_s30 + $0x40] sm:$0xff]  ;;  %v450_v24 = vld [vmem:[%s2218_s30 + $0xc8] sm:$0xff] }
  0x1f   : > { %1891 = vmatprep.mubr.msk.f32.mxu1 %vm452_vm0, %v443_v8  ;;  %1908 = vmatpush3.msra.mxu1 %v422_v7  ;;  %v396_v25 = vld [vmem:[%s2264_s25] sm:$0xff]  ;;  %v434_v26 = vld [vmem:[%s2218_s30 + $0x48] sm:$0xff]  ;;  %v435_v27 = vld [vmem:[%s2218_s30 + $0x50] sm:$0xff] }
  0x20   : > { %1868 = vmatmul.mubr.msk.f32.gmra.mxu0 %vm452_vm0, %v428_v14  ;;  %v397_v28 = vld [vmem:[%s2264_s25 + $0x8] sm:$0xff]  ;;  %v398_v29 = vld [vmem:[%s2264_s25 + $0x10] sm:$0xff]  ;;  %v436_v30 = vld [vmem:[%s2218_s30 + $0x58] sm:$0xff] }
  0x21   : > { %1870 = vmatprep.mubr.msk.f32.mxu0 %vm452_vm0, %v429_v15  ;;  %v437_v31 = vld [vmem:[%s2218_s30 + $0x60] sm:$0xff]  ;;  %v399_v32 = vld [vmem:[%s2264_s25 + $0x18] sm:$0xff]  ;;  %v438_v34 = vld [vmem:[%s2218_s30 + $0x68] sm:$0xff]  ;;  %1949 = vmatpush3.msra.mxu0 %v1062_v55  ;;  %s367_s30 = scalar_lea.vmem [#allocation3], %s1686_s28 }
  0x22   : > { %1892 = vmatmul.mubr.msk.f32.gmra.mxu1 %vm452_vm0, %v444_v12  ;;  %v400_v33 = vld [vmem:[%s2264_s25 + $0x20] sm:$0xff]  ;;  %v401_v35 = vld [vmem:[%s2264_s25 + $0x28] sm:$0xff]  ;;  %v402_v36 = vld [vmem:[%s2264_s25 + $0x30] sm:$0xff]  ;;  %1950 = vmatprep.subr.mxu0 %v1061_v57  ;;  %s1611_s10 = sshll.u32 %s367_s30, 4  ;;  %s1612_s10 = int_to_ptr.vmem [resolvable:$true] %s1611_s10 }
  0x23   : > { %1894 = vmatprep.mubr.msk.f32.mxu1 %vm452_vm0, %v445_v13  ;;  %v403_v37 = vld [vmem:[%s2264_s25 + $0x38] sm:$0xff]  ;;  %v404_v38 = vld [vmem:[%s2264_s25 + $0x40] sm:$0xff]  ;;  %v405_v39 = vld [vmem:[%s2264_s25 + $0x48] sm:$0xff]  ;;  %1951 = vmatpush3.msra.mxu0 %v1061_v57  ;;  %s2038_s23 = scalar_lea.vmem %s1612_s10, 32 }
  0x24   : > { %1871 = vmatmul.mubr.msk.f32.gmra.mxu0 %vm452_vm0, %v430_v18  ;;  %v406_v40 = vld [vmem:[%s2264_s25 + $0x50] sm:$0xff]  ;;  %v407_v41 = vld [vmem:[%s2264_s25 + $0x58] sm:$0xff]  ;;  %v408_v42 = vld [vmem:[%s2264_s25 + $0x60] sm:$0xff]  ;;  %1952 = vmatprep.subr.mxu0 %v1060_v58  ;;  %p2039_p11 = scmp.ne.s32.totalorder %s1612_s10, %s2038_s23 }
  0x25   : > { %1873 = vmatprep.mubr.msk.f32.mxu0 %vm452_vm0, %v431_v19  ;;  %v409_v43 = vld [vmem:[%s2264_s25 + $0x68] sm:$0xff]  ;;  %v410_v44 = vld [vmem:[%s2264_s25 + $0x70] sm:$0xff]  ;;  %v411_v45 = vld [vmem:[%s2264_s25 + $0x78] sm:$0xff]  ;;  %1953 = vmatpush3.msra.mxu0 %v1060_v58 }
  0x26   : > { %1895 = vmatmul.mubr.msk.f32.gmra.mxu1 %vm452_vm0, %v446_v16  ;;  %v412_v46 = vld [vmem:[%s2264_s25 + $0x80] sm:$0xff]  ;;  %v413_v47 = vld [vmem:[%s2264_s25 + $0x88] sm:$0xff]  ;;  %v414_v48 = vld [vmem:[%s2264_s25 + $0x90] sm:$0xff]  ;;  %1954 = vmatprep.subr.mxu0 %v1059_v59  ;;  %p2040_p12 = pnand %p2039_p11, %p2193_p5 }
  0x27   : > { %1897 = vmatprep.mubr.msk.f32.mxu1 %vm452_vm0, %v447_v17  ;;  %v415_v49 = vld [vmem:[%s2264_s25 + $0x98] sm:$0xff]  ;;  %v416_v50 = vld [vmem:[%s2264_s25 + $0xa0] sm:$0xff]  ;;  %v417_v51 = vld [vmem:[%s2264_s25 + $0xa8] sm:$0xff]  ;;  %1955 = vmatpush3.msra.mxu0 %v1059_v59 }
  0x28   : > { %1874 = vmatmul.mubr.msk.f32.gmra.mxu0 %vm452_vm0, %v432_v22  ;;  %v418_v52 = vld [vmem:[%s2264_s25 + $0xb0] sm:$0xff]  ;;  %v419_v53 = vld [vmem:[%s2264_s25 + $0xb8] sm:$0xff]  ;;  %v420_v54 = vld [vmem:[%s2264_s25 + $0xc0] sm:$0xff]  ;;  %p2041_p13 = pneg %p2040_p12 }
  0x29   : > { %1876 = vmatprep.mubr.msk.f32.mxu0 %vm452_vm0, %v433_v23  ;;  %v421_v56 = vld [vmem:[%s2264_s25 + $0xc8] sm:$0xff]  ;;  %v2376_v17 = vld [vmem:[%s2596_s4] ss:$0 sm:$0xff]  ;;  %s2101_s25 = smov [#allocation3]  }
  0x2a   : > { %1898 = vmatmul.mubr.msk.f32.gmra.mxu1 %vm452_vm0, %v448_v20  ;;  %s2042_s24 = sshll.u32 %s2101_s25, 4  ;;  %s2043_s24 = int_to_ptr.vmem [resolvable:$false] %s2042_s24 }
  0x2b   : > { %1900 = vmatprep.mubr.msk.f32.mxu1 %vm452_vm0, %v449_v21  ;;  %s2044_s8 = scalar_lea.vmem %s2043_s24, 64  ;;  %p2045_p0 = scmp.lt.s32.totalorder %s1612_s10, %s2043_s24 }
  0x2c   : > { %1877 = vmatmul.mubr.msk.f32.gmra.mxu0 %vm452_vm0, %v434_v26  ;;  %p2046_p1 = scmp.lt.s32.totalorder %s2044_s8, %s2038_s23 }
  0x2d   : > { %1879 = vmatprep.mubr.msk.f32.mxu0 %vm452_vm0, %v435_v27 }
  0x2e   : > { %1901 = vmatmul.mubr.msk.f32.gmra.mxu1 %vm452_vm0, %v450_v24  ;;  %p2047_p2 = por %p2046_p1, %p2045_p0 }
  0x2f   : > { %1909 = vmatprep.mubr.msk.f32.mxu1 %vm726_vm1, %v396_v25 }
  0x30   : > { %1880 = vmatmul.mubr.msk.f32.gmra.mxu0 %vm452_vm0, %v436_v30  ;;  %p2048_p3 = pnand %p2047_p2, %p2041_p13 }
  0x31   : > { %1882 = vmatprep.mubr.msk.f32.mxu0 %vm452_vm0, %v437_v31 }
  0x32   : > { %1910 = vmatmul.mubr.msk.f32.vlgmr.msra.gmra.mxu1 %vm726_vm1, %v397_v28 }
  0x33   : > { %1912 = vmatprep.mubr.msk.f32.mxu1 %vm726_vm1, %v398_v29 }
  0x34   : > { %1883 = vmatmul.mubr.msk.f32.gmra.mxu0 %vm452_vm0, %v438_v34 }
  0x36   : > { %1913 = vmatmul.mubr.msk.f32.gmra.mxu1 %vm726_vm1, %v399_v32 }
  0x37   : > { %1915 = vmatprep.mubr.msk.f32.mxu1 %vm726_vm1, %v400_v33 }
  0x3a   : > { %1916 = vmatmul.mubr.msk.f32.gmra.mxu1 %vm726_vm1, %v401_v35 }
  0x3b   : > { %1918 = vmatprep.mubr.msk.f32.mxu1 %vm726_vm1, %v402_v36 }
  0x3e   : > { %1919 = vmatmul.mubr.msk.f32.gmra.mxu1 %vm726_vm1, %v403_v37 }
  0x3f   : > { %1921 = vmatprep.mubr.msk.f32.mxu1 %vm726_vm1, %v404_v38 }
  0x42   : > { %1922 = vmatmul.mubr.msk.f32.gmra.mxu1 %vm726_vm1, %v405_v39 }
  0x43   : > { %1924 = vmatprep.mubr.msk.f32.mxu1 %vm726_vm1, %v406_v40 }
  0x46   : > { %1925 = vmatmul.mubr.msk.f32.gmra.mxu1 %vm726_vm1, %v407_v41 }
  0x47   : > { %1927 = vmatprep.mubr.msk.f32.mxu1 %vm726_vm1, %v408_v42 }
  0x4a   : > { %1928 = vmatmul.mubr.msk.f32.gmra.mxu1 %vm726_vm1, %v409_v43 }
  0x4b   : > { %1930 = vmatprep.mubr.msk.f32.mxu1 %vm726_vm1, %v410_v44 }
  0x4e   : > { %1931 = vmatmul.mubr.msk.f32.gmra.mxu1 %vm726_vm1, %v411_v45 }
  0x4f   : > { %1933 = vmatprep.mubr.msk.f32.mxu1 %vm726_vm1, %v412_v46 }
  0x52   : > { %1934 = vmatmul.mubr.msk.f32.gmra.mxu1 %vm726_vm1, %v413_v47 }
  0x53   : > { %1936 = vmatprep.mubr.msk.f32.mxu1 %vm726_vm1, %v414_v48 }
  0x56   : > { %1937 = vmatmul.mubr.msk.f32.gmra.mxu1 %vm726_vm1, %v415_v49 }
  0x57   : > { %1939 = vmatprep.mubr.msk.f32.mxu1 %vm726_vm1, %v416_v50 }
  0x5a   : > { %1940 = vmatmul.mubr.msk.f32.gmra.mxu1 %vm726_vm1, %v417_v51 }
  0x5b   : > { %1942 = vmatprep.mubr.msk.f32.mxu1 %vm726_vm1, %v418_v52 }
  0x5e   : > { %1943 = vmatmul.mubr.msk.f32.gmra.mxu1 %vm726_vm1, %v419_v53 }
  0x5f   : > { %1945 = vmatprep.mubr.msk.f32.mxu1 %vm726_vm1, %v420_v54 }
  0x62   : > { %1946 = vmatmul.mubr.msk.f32.gmra.mxu1 %vm726_vm1, %v421_v56 }
  0xda   : > { %v2349_v60 = vpop.f32.mrf.mxu1 }
  0xdc   : > { %v2351_v61 = vpop.f32.mrf.mxu1  ;;  %v1866_v0 = vpop.f32.mrf.mxu0 }
  0xde   : > { %v2353_v62 = vpop.f32.mrf.mxu1  ;;  %v597_v2 = vpop.f32.mrf.mxu0 }
  0xe0   : > { %v2355_v63 = vpop.f32.mrf.mxu1  ;;  %v1869_v4 = vpop.f32.mrf.mxu0 }
  0xe2   : > { %v2357_v1 = vpop.f32.mrf.mxu1  ;;  %v607_v6 = vpop.f32.mrf.mxu0 }
  0xe4   : > { %v2359_v3 = vpop.f32.mrf.mxu1  ;;  %v1872_v8 = vpop.f32.mrf.mxu0 }
  0xe6   : > { %v2361_v5 = vpop.f32.mrf.mxu1  ;;  %v617_v11 = vpop.f32.mrf.mxu0 }
  0xe8   : > { %v2363_v7 = vpop.f32.mrf.mxu1  ;;  %v1875_v14 = vpop.f32.mrf.mxu0 }
  0xea   : > { %v2365_v9 = vpop.f32.mrf.mxu1  ;;  %v627_v19 = vpop.f32.mrf.mxu0 }
  0xec   : > { %v2367_v10 = vpop.f32.mrf.mxu1  ;;  %v1878_v26 = vpop.f32.mrf.mxu0 }
  0xee   : > { %v2369_v12 = vpop.f32.mrf.mxu1  ;;  %v637_v35 = vpop.f32.mrf.mxu0 }
  0xf0   : > { %v2371_v13 = vpop.f32.mrf.mxu1  ;;  %v1881_v44 = vpop.f32.mrf.mxu0 }
  0xf2   : > { %v1911_v15 = vpop.f32.mrf.mxu1  ;;  %v647_v53 = vpop.f32.mrf.mxu0 }
  0xf3   : > { %v877_v16 = vadd.f32 %v1911_v15, %v1866_v0 }
  0xf4   : > { %v871_v18 = vpop.f32.mrf.mxu1 }
  0xf5   : > { %v872_v20 = vadd.f32 %v871_v18, %v597_v2  ;;  %v1008_v21 = vadd.f32 %v2376_v17, %v877_v16  ;;  %v1884_v2 = vpop.f32.mrf.mxu0 }
  0xf6   : > { %v1914_v22 = vpop.f32.mrf.mxu1 }
  0xf7   : > { %v1007_v23 = vadd.f32 %v2376_v17, %v872_v20  ;;  %v887_v24 = vadd.f32 %v1914_v22, %v1869_v4  ;;  %v1034_v29 = vmax.f32 %v1008_v21, 0.0 }
  0xf8   : > { %v881_v25 = vpop.f32.mrf.mxu1 }
  0xf9   : > { %v1033_v27 = vmax.f32 %v1007_v23, 0.0  ;;  %v882_v28 = vadd.f32 %v881_v25, %v607_v6  ;;  %v1010_v30 = vadd.f32 %v2376_v17, %v887_v24 }
  0xfa   : > { %v1917_v31 = vpop.f32.mrf.mxu1 }
  0xfb   : > { %v1009_v32 = vadd.f32 %v2376_v17, %v882_v28  ;;  %v897_v33 = vadd.f32 %v1917_v31, %v1872_v8  ;;  %1956 = vmatprep.mubr.msk.f32.mxu0 %vm1070_vm2, %v1033_v27  ;;  %v1036_v38 = vmax.f32 %v1010_v30, 0.0 }
  0xfc   : > { %v891_v34 = vpop.f32.mrf.mxu1  ;;  %1957 = vmatmul.mubr.msk.f32.vlgmr.msra.gmra.mxu0 %vm1070_vm2, %v1034_v29 }
  0xfd   : > { %v1035_v36 = vmax.f32 %v1009_v32, 0.0  ;;  %v892_v37 = vadd.f32 %v891_v34, %v617_v11  ;;  %v1012_v39 = vadd.f32 %v2376_v17, %v897_v33 }
  0xfe   : > { %v1920_v40 = vpop.f32.mrf.mxu1 }
  0xff   : > { %v1011_v41 = vadd.f32 %v2376_v17, %v892_v37  ;;  %v907_v42 = vadd.f32 %v1920_v40, %v1875_v14  ;;  %1959 = vmatprep.mubr.msk.f32.mxu0 %vm1070_vm2, %v1035_v36  ;;  %v1038_v47 = vmax.f32 %v1012_v39, 0.0 }
 0x100   : > { %v901_v43 = vpop.f32.mrf.mxu1  ;;  %1960 = vmatmul.mubr.msk.f32.gmra.mxu0 %vm1070_vm2, %v1036_v38 }
 0x101   : > { %v1037_v45 = vmax.f32 %v1011_v41, 0.0  ;;  %v902_v46 = vadd.f32 %v901_v43, %v627_v19  ;;  %v1014_v48 = vadd.f32 %v2376_v17, %v907_v42  ;;  %v657_v19 = vpop.f32.mrf.mxu0 }
 0x102   : > { %v1923_v49 = vpop.f32.mrf.mxu1 }
 0x103   : > { %v1013_v50 = vadd.f32 %v2376_v17, %v902_v46  ;;  %v917_v51 = vadd.f32 %v1923_v49, %v1878_v26  ;;  %1962 = vmatprep.mubr.msk.f32.mxu0 %vm1070_vm2, %v1037_v45  ;;  %v1040_v56 = vmax.f32 %v1014_v48, 0.0 }
 0x104   : > { %v911_v52 = vpop.f32.mrf.mxu1  ;;  %1963 = vmatmul.mubr.msk.f32.gmra.mxu0 %vm1070_vm2, %v1038_v47 }
 0x105   : > { %v1039_v54 = vmax.f32 %v1013_v50, 0.0  ;;  %v912_v55 = vadd.f32 %v911_v52, %v637_v35  ;;  %v1016_v57 = vadd.f32 %v2376_v17, %v917_v51 }
 0x106   : > { %v1926_v58 = vpop.f32.mrf.mxu1 }
 0x107   : > { %v1015_v59 = vadd.f32 %v2376_v17, %v912_v55  ;;  %v927_v0 = vadd.f32 %v1926_v58, %v1881_v44  ;;  %1965 = vmatprep.mubr.msk.f32.mxu0 %vm1070_vm2, %v1039_v54  ;;  %v1042_v11 = vmax.f32 %v1016_v57, 0.0 }
 0x108   : > { %v921_v4 = vpop.f32.mrf.mxu1  ;;  %1966 = vmatmul.mubr.msk.f32.gmra.mxu0 %vm1070_vm2, %v1040_v56 }
 0x109   : > { %v1041_v6 = vmax.f32 %v1015_v59, 0.0  ;;  %v922_v8 = vadd.f32 %v921_v4, %v647_v53  ;;  %v1018_v14 = vadd.f32 %v2376_v17, %v927_v0 }
 0x10a   : > { %v1929_v15 = vpop.f32.mrf.mxu1 }
 0x10b   : > { %v1017_v16 = vadd.f32 %v2376_v17, %v922_v8  ;;  %v937_v18 = vadd.f32 %v1929_v15, %v1884_v2  ;;  %1968 = vmatprep.mubr.msk.f32.mxu0 %vm1070_vm2, %v1041_v6  ;;  %v1044_v23 = vmax.f32 %v1018_v14, 0.0 }
 0x10c   : > { %v931_v20 = vpop.f32.mrf.mxu1  ;;  %1969 = vmatmul.mubr.msk.f32.gmra.mxu0 %vm1070_vm2, %v1042_v11 }
 0x10d   : > { %v1043_v21 = vmax.f32 %v1017_v16, 0.0  ;;  %v932_v22 = vadd.f32 %v931_v20, %v657_v19  ;;  %v1020_v24 = vadd.f32 %v2376_v17, %v937_v18 }
 0x10e   : > { %v1932_v25 = vpop.f32.mrf.mxu1 }
 0x10f   : > { %v1019_v26 = vadd.f32 %v2376_v17, %v932_v22  ;;  %v947_v27 = vadd.f32 %v1932_v25, %v2349_v60  ;;  %1971 = vmatprep.mubr.msk.f32.mxu0 %vm1070_vm2, %v1043_v21  ;;  %v1046_v31 = vmax.f32 %v1020_v24, 0.0 }
 0x110   : > { %v941_v28 = vpop.f32.mrf.mxu1  ;;  %1972 = vmatmul.mubr.msk.f32.gmra.mxu0 %vm1070_vm2, %v1044_v23 }
 0x111   : > { %v1045_v29 = vmax.f32 %v1019_v26, 0.0  ;;  %v942_v30 = vadd.f32 %v941_v28, %v2351_v61  ;;  %v1022_v32 = vadd.f32 %v2376_v17, %v947_v27 }
 0x112   : > { %v1935_v33 = vpop.f32.mrf.mxu1 }
 0x113   : > { %v1021_v34 = vadd.f32 %v2376_v17, %v942_v30  ;;  %v957_v35 = vadd.f32 %v1935_v33, %v2353_v62  ;;  %1974 = vmatprep.mubr.msk.f32.mxu0 %vm1070_vm2, %v1045_v29  ;;  %v1048_v38 = vmax.f32 %v1022_v32, 0.0 }
 0x114   : > { %v951_v36 = vpop.f32.mrf.mxu1  ;;  %1975 = vmatmul.mubr.msk.f32.gmra.mxu0 %vm1070_vm2, %v1046_v31 }
 0x115   : > { %v1047_v60 = vmax.f32 %v1021_v34, 0.0  ;;  %v952_v37 = vadd.f32 %v951_v36, %v2355_v63  ;;  %v1024_v39 = vadd.f32 %v2376_v17, %v957_v35 }
 0x116   : > { %v1938_v61 = vpop.f32.mrf.mxu1 }
 0x117   : > { %v1023_v40 = vadd.f32 %v2376_v17, %v952_v37  ;;  %v967_v41 = vadd.f32 %v1938_v61, %v2357_v1  ;;  %1977 = vmatprep.mubr.msk.f32.mxu0 %vm1070_vm2, %v1047_v60  ;;  %v1050_v44 = vmax.f32 %v1024_v39, 0.0 }
 0x118   : > { %v961_v42 = vpop.f32.mrf.mxu1  ;;  %1978 = vmatmul.mubr.msk.f32.gmra.mxu0 %vm1070_vm2, %v1048_v38 }
 0x119   : > { %v1049_v62 = vmax.f32 %v1023_v40, 0.0  ;;  %v962_v43 = vadd.f32 %v961_v42, %v2359_v3  ;;  %v1026_v45 = vadd.f32 %v2376_v17, %v967_v41 }
 0x11a   : > { %v1941_v63 = vpop.f32.mrf.mxu1 }
 0x11b   : > { %v1025_v46 = vadd.f32 %v2376_v17, %v962_v43  ;;  %v977_v47 = vadd.f32 %v1941_v63, %v2361_v5  ;;  %1980 = vmatprep.mubr.msk.f32.mxu0 %vm1070_vm2, %v1049_v62  ;;  %v1052_v50 = vmax.f32 %v1026_v45, 0.0 }
 0x11c   : > { %v971_v48 = vpop.f32.mrf.mxu1  ;;  %1981 = vmatmul.mubr.msk.f32.gmra.mxu0 %vm1070_vm2, %v1050_v44 }
 0x11d   : > { %v1051_v1 = vmax.f32 %v1025_v46, 0.0  ;;  %v972_v49 = vadd.f32 %v971_v48, %v2363_v7  ;;  %v1028_v51 = vadd.f32 %v2376_v17, %v977_v47 }
 0x11e   : > { %v1944_v3 = vpop.f32.mrf.mxu1 }
 0x11f   : > { %v1027_v52 = vadd.f32 %v2376_v17, %v972_v49  ;;  %v987_v53 = vadd.f32 %v1944_v3, %v2365_v9  ;;  %1983 = vmatprep.mubr.msk.f32.mxu0 %vm1070_vm2, %v1051_v1  ;;  %v1054_v56 = vmax.f32 %v1028_v51, 0.0 }
 0x120   : > { %v981_v54 = vpop.f32.mrf.mxu1  ;;  %1984 = vmatmul.mubr.msk.f32.gmra.mxu0 %vm1070_vm2, %v1052_v50 }
 0x121   : > { %v1053_v5 = vmax.f32 %v1027_v52, 0.0  ;;  %v982_v55 = vadd.f32 %v981_v54, %v2367_v10  ;;  %v1030_v57 = vadd.f32 %v2376_v17, %v987_v53 }
 0x122   : > { %v1947_v7 = vpop.f32.mrf.mxu1 }
 0x123   : > { %v1029_v58 = vadd.f32 %v2376_v17, %v982_v55  ;;  %v997_v59 = vadd.f32 %v1947_v7, %v2369_v12  ;;  %1986 = vmatprep.mubr.msk.f32.mxu0 %vm1070_vm2, %v1053_v5  ;;  %v1056_v4 = vmax.f32 %v1030_v57, 0.0  ;;  %v2445_v12 = vld [vmem:[%s2598_s6] ss:$0 sm:$0xff] }
 0x124   : > { %v991_v0 = vpop.f32.mrf.mxu1  ;;  %1987 = vmatmul.mubr.msk.f32.gmra.mxu0 %vm1070_vm2, %v1054_v56 }
 0x125   : > { %v1055_v9 = vmax.f32 %v1029_v58, 0.0  ;;  %v992_v2 = vadd.f32 %v991_v0, %v2371_v13  ;;  %v1032_v6 = vadd.f32 %v2376_v17, %v997_v59 }
 0x127   : > { %v1031_v10 = vadd.f32 %v2376_v17, %v992_v2  ;;  %1989 = vmatprep.mubr.msk.f32.mxu0 %vm1070_vm2, %v1055_v9  ;;  %v1058_v11 = vmax.f32 %v1032_v6, 0.0  ;;  %v2451_v17 = vld [vmem:[%s2599_s7] ss:$0 sm:$0xff] }
 0x128   : > { %1990 = vmatmul.mubr.msk.f32.gmra.mxu0 %vm1070_vm2, %v1056_v4 }
 0x129   : > { %v1057_v8 = vmax.f32 %v1031_v10, 0.0 }
 0x12b   : > { %1992 = vmatprep.mubr.msk.f32.mxu0 %vm1070_vm2, %v1057_v8 }
 0x12c   : > { %1993 = vmatmul.mubr.msk.f32.gmra.mxu0 %vm1070_vm2, %v1058_v11 }
 0x1bc   : > { %v1958_v13 = vpop.f32.mrf.mxu0 }
 0x1bd   : > { %v1221_v14 = vadd.f32 %v1958_v13, %v2445_v12 }
 0x1be   : > { %v1215_v15 = vpop.f32.mrf.mxu0 }
 0x1bf   : > { %v1345_v16 = vmax.f32 %v1221_v14, 0.0  ;;  %v1216_v18 = vadd.f32 %v2445_v12, %v1215_v15 }
 0x1c0   : > { %v1961_v19 = vpop.f32.mrf.mxu0 }
 0x1c1   : > { %v1344_v20 = vmax.f32 %v1216_v18, 0.0  ;;  %v1231_v21 = vadd.f32 %v1961_v19, %v2445_v12  ;;  %v1378_v22 = vmul.f32 %v2451_v17, %v1345_v16 }
 0x1c2   : > { %v1225_v23 = vpop.f32.mrf.mxu0 }
 0x1c3   : > { %v1347_v24 = vmax.f32 %v1231_v21, 0.0  ;;  %v1226_v25 = vadd.f32 %v2445_v12, %v1225_v23  ;;  %v1406_v26 = vsel %vm1070_vm2, %v1378_v22, 0.0  ;;  %v1377_v27 = vmul.f32 %v2451_v17, %v1344_v20 }
 0x1c4   : > { %1407 = vadd.xlane.f32.xlu0 %v1406_v26  ;;  %v1964_v28 = vpop.f32.mrf.mxu0 }
 0x1c5   : > { %v1346_v29 = vmax.f32 %v1226_v25, 0.0  ;;  %v1241_v30 = vadd.f32 %v1964_v28, %v2445_v12  ;;  %v1380_v31 = vmul.f32 %v2451_v17, %v1347_v24  ;;  %v1403_v33 = vsel %vm1070_vm2, %v1377_v27, 0.0 }
 0x1c6   : > { %v1235_v32 = vpop.f32.mrf.mxu0 }
 0x1c7   : > { %v1349_v34 = vmax.f32 %v1241_v30, 0.0  ;;  %v1236_v35 = vadd.f32 %v2445_v12, %v1235_v32  ;;  %v1412_v36 = vsel %vm1070_vm2, %v1380_v31, 0.0  ;;  %v1379_v60 = vmul.f32 %v2451_v17, %v1346_v29 }
 0x1c8   : > { %1413 = vadd.xlane.f32.xlu1 %v1412_v36  ;;  %v1967_v37 = vpop.f32.mrf.mxu0  ;;  %1404 = vadd.xlane.f32.xlu0 %v1403_v33 }
 0x1c9   : > { %v1348_v38 = vmax.f32 %v1236_v35, 0.0  ;;  %v1251_v39 = vadd.f32 %v1967_v37, %v2445_v12  ;;  %v1409_v40 = vsel %vm1070_vm2, %v1379_v60, 0.0  ;;  %v1382_v43 = vmul.f32 %v2451_v17, %v1349_v34 }
 0x1ca   : > { %v1245_v61 = vpop.f32.mrf.mxu0 }
 0x1cb   : > { %v1351_v41 = vmax.f32 %v1251_v39, 0.0  ;;  %v1246_v42 = vadd.f32 %v2445_v12, %v1245_v61  ;;  %v1381_v62 = vmul.f32 %v2451_v17, %v1348_v38  ;;  %v1418_v1 = vsel %vm1070_vm2, %v1382_v43, 0.0 }
 0x1cc   : > { %v1970_v44 = vpop.f32.mrf.mxu0  ;;  %1410 = vadd.xlane.f32.xlu1 %v1409_v40 }
 0x1cd   : > { %v1350_v45 = vmax.f32 %v1246_v42, 0.0  ;;  %v1261_v63 = vadd.f32 %v1970_v44, %v2445_v12  ;;  %v1415_v46 = vsel %vm1070_vm2, %v1381_v62, 0.0  ;;  %v1384_v47 = vmul.f32 %v2451_v17, %v1351_v41 }
 0x1ce   : > { %v1255_v48 = vpop.f32.mrf.mxu0  ;;  %1416 = vadd.xlane.f32.xlu0 %v1415_v46 }
 0x1cf   : > { %v1353_v50 = vmax.f32 %v1261_v63, 0.0  ;;  %v1256_v51 = vadd.f32 %v2445_v12, %v1255_v48  ;;  %v1424_v3 = vsel %vm1070_vm2, %v1384_v47, 0.0  ;;  %v1383_v52 = vmul.f32 %v2451_v17, %v1350_v45 }
 0x1d0   : > { %v1973_v49 = vpop.f32.mrf.mxu0  ;;  %1419 = vadd.xlane.f32.xlu1 %v1418_v1 }
 0x1d1   : > { %v1271_v54 = vadd.f32 %v1973_v49, %v2445_v12  ;;  %v1352_v55 = vmax.f32 %v1256_v51, 0.0  ;;  %v1421_v56 = vsel %vm1070_vm2, %v1383_v52, 0.0  ;;  %v1386_v57 = vmul.f32 %v2451_v17, %v1353_v50 }
 0x1d2   : > { %v1265_v53 = vpop.f32.mrf.mxu0  ;;  %1425 = vadd.xlane.f32.xlu0 %v1424_v3 }
 0x1d3   : > { %v1355_v58 = vmax.f32 %v1271_v54, 0.0  ;;  %v1266_v0 = vadd.f32 %v2445_v12, %v1265_v53  ;;  %v1430_v9 = vsel %vm1070_vm2, %v1386_v57, 0.0  ;;  %v1385_v2 = vmul.f32 %v2451_v17, %v1352_v55 }
 0x1d4   : > { %v1976_v5 = vpop.f32.mrf.mxu0 }
 0x1d5   : > { %v1281_v6 = vadd.f32 %v1976_v5, %v2445_v12  ;;  %v1388_v8 = vmul.f32 %v2451_v17, %v1355_v58  ;;  %v1354_v11 = vmax.f32 %v1266_v0, 0.0  ;;  %v1427_v14 = vsel %vm1070_vm2, %v1385_v2, 0.0 }
 0x1d6   : > { %v1275_v7 = vpop.f32.mrf.mxu0  ;;  %1422 = vadd.xlane.f32.xlu0 %v1421_v56 }
 0x1d7   : > { %v1357_v19 = vmax.f32 %v1281_v6, 0.0  ;;  %v1276_v20 = vadd.f32 %v2445_v12, %v1275_v7  ;;  %v1436_v22 = vsel %vm1070_vm2, %v1388_v8, 0.0  ;;  %v1387_v26 = vmul.f32 %v2451_v17, %v1354_v11 }
 0x1d8   : > { %v1979_v59 = vpop.f32.mrf.mxu0 }
 0x1d9   : > { %v1356_v33 = vmax.f32 %v1276_v20, 0.0  ;;  %v1291_v34 = vadd.f32 %v1979_v59, %v2445_v12  ;;  %v1433_v35 = vsel %vm1070_vm2, %v1387_v26, 0.0  ;;  %v1390_v36 = vmul.f32 %v2451_v17, %v1357_v19 }
 0x1da   : > { %v1285_v4 = vpop.f32.mrf.mxu0  ;;  %1431 = vadd.xlane.f32.xlu0 %v1430_v9  ;;  %v2530_v20 = vstv %s1481_s26 }
 0x1db   : > { %v1359_v41 = vmax.f32 %v1291_v34, 0.0  ;;  %v1286_v42 = vadd.f32 %v2445_v12, %v1285_v4  ;;  %v1442_v62 = vsel %vm1070_vm2, %v1390_v36, 0.0  ;;  %v1389_v43 = vmul.f32 %v2451_v17, %v1356_v33 }
 0x1dc   : > { %v1982_v10 = vpop.f32.mrf.mxu0 }
 0x1dd   : > { %v1301_v13 = vadd.f32 %v1982_v10, %v2445_v12  ;;  %v1358_v1 = vmax.f32 %v1286_v42, 0.0  ;;  %v1439_v50 = vsel %vm1070_vm2, %v1389_v43, 0.0  ;;  %v1392_v51 = vmul.f32 %v2451_v17, %v1359_v41 }
 0x1de   : > { %v1295_v15 = vpop.f32.mrf.mxu0  ;;  %1428 = vadd.xlane.f32.xlu0 %v1427_v14 }
 0x1df   : > { %v1361_v16 = vmax.f32 %v1301_v13, 0.0  ;;  %v1296_v18 = vadd.f32 %v2445_v12, %v1295_v15  ;;  %v1448_v7 = vsel %vm1070_vm2, %v1392_v51, 0.0  ;;  %v1391_v58 = vmul.f32 %v2451_v17, %v1358_v1 }
 0x1e0   : > { %v1985_v21 = vpop.f32.mrf.mxu0 }
 0x1e1   : > { %v1360_v23 = vmax.f32 %v1296_v18, 0.0  ;;  %v1311_v24 = vadd.f32 %v1985_v21, %v2445_v12  ;;  %v1394_v25 = vmul.f32 %v2451_v17, %v1361_v16  ;;  %v1445_v10 = vsel %vm1070_vm2, %v1391_v58, 0.0 }
 0x1e2   : > { %v1305_v27 = vpop.f32.mrf.mxu0  ;;  %1437 = vadd.xlane.f32.xlu0 %v1436_v22 }
 0x1e3   : > { %v1363_v28 = vmax.f32 %v1311_v24, 0.0  ;;  %v1306_v29 = vadd.f32 %v2445_v12, %v1305_v27  ;;  %v1454_v30 = vsel %vm1070_vm2, %v1394_v25, 0.0  ;;  %v1393_v31 = vmul.f32 %v2451_v17, %v1360_v23 }
 0x1e4   : > { %v1988_v32 = vpop.f32.mrf.mxu0  ;;  %1455 = vadd.xlane.f32.xlu1 %v1454_v30 }
 0x1e5   : > { %v1362_v37 = vmax.f32 %v1306_v29, 0.0  ;;  %v1321_v38 = vadd.f32 %v1988_v32, %v2445_v12  ;;  %v1451_v39 = vsel %vm1070_vm2, %v1393_v31, 0.0  ;;  %v1396_v61 = vmul.f32 %v2451_v17, %v1363_v28 }
 0x1e6   : > { %v1315_v60 = vpop.f32.mrf.mxu0  ;;  %1434 = vadd.xlane.f32.xlu0 %v1433_v35 }
 0x1e7   : > { %v1316_v44 = vadd.f32 %v2445_v12, %v1315_v60  ;;  %v1365_v63 = vmax.f32 %v1321_v38, 0.0  ;;  %v1460_v46 = vsel %vm1070_vm2, %v1396_v61, 0.0  ;;  %v1395_v47 = vmul.f32 %v2451_v17, %v1362_v37 }
 0x1e8   : > { %v1991_v40 = vpop.f32.mrf.mxu0  ;;  %1452 = vadd.xlane.f32.xlu1 %v1451_v39 }
 0x1e9   : > { %v1364_v3 = vmax.f32 %v1316_v44, 0.0  ;;  %v1331_v52 = vadd.f32 %v1991_v40, %v2445_v12  ;;  %v1457_v55 = vsel %vm1070_vm2, %v1395_v47, 0.0  ;;  %v1398_v56 = vmul.f32 %v2451_v17, %v1365_v63 }
 0x1ea   : > { %v1325_v45 = vpop.f32.mrf.mxu0  ;;  %1443 = vadd.xlane.f32.xlu0 %v1442_v62 }
 0x1eb   : > { %v1367_v0 = vmax.f32 %v1331_v52, 0.0  ;;  %v1326_v9 = vadd.f32 %v2445_v12, %v1325_v45  ;;  %v1466_v2 = vsel %vm1070_vm2, %v1398_v56, 0.0  ;;  %v1397_v4 = vmul.f32 %v2451_v17, %v1364_v3 }
 0x1ec   : > { %v1994_v48 = vpop.f32.mrf.mxu0  ;;  %1461 = vadd.xlane.f32.xlu1 %v1460_v46 }
 0x1ed   : > { %v1341_v49 = vadd.f32 %v1994_v48, %v2445_v12  ;;  %v1366_v8 = vmax.f32 %v1326_v9, 0.0  ;;  %v1463_v11 = vsel %vm1070_vm2, %v1397_v4, 0.0  ;;  %v1400_v13 = vmul.f32 %v2451_v17, %v1367_v0 }
 0x1ee   : > { %v1335_v53 = vpop.f32.mrf.mxu0  ;;  %1440 = vadd.xlane.f32.xlu0 %v1439_v50  ;;  %v2100_v4 = vmov 1966171168  }
 0x1ef   : > { %v1369_v54 = vmax.f32 %v1341_v49, 0.0  ;;  %v1336_v5 = vadd.f32 %v2445_v12, %v1335_v53  ;;  %v1472_v14 = vsel %vm1070_vm2, %v1400_v13, 0.0  ;;  %v1399_v12 = vmul.f32 %v2451_v17, %v1366_v8 }
 0x1f0   : > { %1458 = vadd.xlane.f32.xlu1 %v1457_v55 }
 0x1f1   : > { %v1368_v57 = vmax.f32 %v1336_v5, 0.0  ;;  %v1402_v59 = vmul.f32 %v2451_v17, %v1369_v54  ;;  %v1469_v15 = vsel %vm1070_vm2, %v1399_v12, 0.0 }
 0x1f2   : > { %1449 = vadd.xlane.f32.xlu0 %v1448_v7 }
 0x1f3   : > { %v1401_v6 = vmul.f32 %v2451_v17, %v1368_v57  ;;  %v1478_v16 = vsel %vm1070_vm2, %v1402_v59, 0.0 }
 0x1f4   : > { %1467 = vadd.xlane.f32.xlu1 %v1466_v2 }
 0x1f5   : > { %v1475_v18 = vsel %vm1070_vm2, %v1401_v6, 0.0  ;;  %v1577_v6 = vunpack.c.l.s4 %v2100_v4 }
 0x1f6   : > { %1446 = vadd.xlane.f32.xlu0 %v1445_v10  ;;  %v1579_v10 = vlaneseq }
 0x1f7   : > { %v1578_v8 = vunpack.c.0.s8 %v1577_v6 }
 0x1f8   : > { %1464 = vadd.xlane.f32.xlu1 %v1463_v11  ;;  %v1580_v11 = vshrl.u32 %v1579_v10, 7  ;;  %vm1593_vm3 = vcmp.lt.s32.totalorder %v1579_v10, 208 }
 0x1fc   : > { %1473 = vadd.xlane.f32.xlu1 %v1472_v14  ;;  %v1581_v14 = vsub.s32 %v1578_v8, %v1580_v11 }
 0x200   : > { %1470 = vadd.xlane.f32.xlu1 %v1469_v15 }
 0x204   : > { %1479 = vadd.xlane.f32.xlu1 %v1478_v16 }
 0x208   : > { %1476 = vadd.xlane.f32.xlu1 %v1475_v18 }
 0x24d   : > { %v1408_v19 = vpop.xlane.xlu0 %1407 }
 0x24e   : > { %v1484_v17 = vadd.f32 %v2530_v20, %v1408_v19 }
 0x251   : > { %v1414_v21 = vpop.xlane.xlu1 %1413  ;;  %v1405_v22 = vpop.xlane.xlu0 %1404 }
 0x252   : > { %v1483_v23 = vadd.f32 %v2530_v20, %v1405_v22  ;;  %v1486_v28 = vadd.f32 %v2530_v20, %v1414_v21 }
 0x254   : > { %1509 = vxpose.xlu0.b32.start [1/16] (narrow) %v1483_v23, 8 }
 0x255   : > { %v1411_v24 = vpop.xlane.xlu1 %1410 }
 0x256   : > { %v1485_v26 = vadd.f32 %v2530_v20, %v1411_v24 }
 0x257   : > { %v1417_v25 = vpop.xlane.xlu0 %1416 }
 0x258   : > { %1510 = vxpose.xlu0.b32.cont [2/16] (narrow) %v1484_v17, 8  ;;  %v1487_v30 = vadd.f32 %v2530_v20, %v1417_v25 }
 0x259   : > { %v1420_v31 = vpop.xlane.xlu1 %1419 }
 0x25a   : > { %v1488_v33 = vadd.f32 %v2530_v20, %v1420_v31 }
 0x25b   : > { %v1426_v27 = vpop.xlane.xlu0 %1425 }
 0x25c   : > { %1511 = vxpose.xlu0.b32.cont [3/16] (narrow) %v1485_v26, 8  ;;  %v1490_v37 = vadd.f32 %v2530_v20, %v1426_v27 }
 0x25f   : > { %v1423_v29 = vpop.xlane.xlu0 %1422 }
 0x260   : > { %1512 = vxpose.xlu0.b32.cont [4/16] (narrow) %v1486_v28, 8  ;;  %v1489_v35 = vadd.f32 %v2530_v20, %v1423_v29 }
 0x263   : > { %v1432_v32 = vpop.xlane.xlu0 %1431 }
 0x264   : > { %1513 = vxpose.xlu0.b32.cont [5/16] (narrow) %v1487_v30, 8  ;;  %v1492_v62 = vadd.f32 %v2530_v20, %v1432_v32 }
 0x267   : > { %v1429_v34 = vpop.xlane.xlu0 %1428 }
 0x268   : > { %1514 = vxpose.xlu0.b32.cont [6/16] (narrow) %v1488_v33, 8  ;;  %v1491_v61 = vadd.f32 %v2530_v20, %v1429_v34 }
 0x26b   : > { %v1438_v36 = vpop.xlane.xlu0 %1437 }
 0x26c   : > { %1515 = vxpose.xlu0.b32.cont [7/16] (narrow) %v1489_v35, 8  ;;  %v1494_v48 = vadd.f32 %v2530_v20, %v1438_v36 }
 0x26d   : > { %v1456_v60 = vpop.xlane.xlu1 %1455 }
 0x26e   : > { %v1500_v43 = vadd.f32 %v2530_v20, %v1456_v60 }
 0x26f   : > { %v1435_v38 = vpop.xlane.xlu0 %1434 }
 0x270   : > { %1516 = vxpose.xlu0.b32.cont [8/16] (narrow) %v1490_v37, 8  ;;  %v1493_v45 = vadd.f32 %v2530_v20, %v1435_v38 }
 0x271   : > { %v1453_v39 = vpop.xlane.xlu1 %1452 }
 0x272   : > { %v1499_v40 = vadd.f32 %v2530_v20, %v1453_v39 }
 0x273   : > { %v1444_v41 = vpop.xlane.xlu0 %1443 }
 0x274   : > { %1541 = vxpose.xlu1.b32.start [1/10] (short) (narrow) %v1499_v40, 8  ;;  %1517 = vxpose.xlu0.b32.cont [9/16] (narrow) %v1491_v61, 8  ;;  %v1496_v53 = vadd.f32 %v2530_v20, %v1444_v41 }
 0x275   : > { %v1462_v42 = vpop.xlane.xlu1 %1461 }
 0x276   : > { %v1502_v1 = vadd.f32 %v2530_v20, %v1462_v42 }
 0x277   : > { %v1441_v46 = vpop.xlane.xlu0 %1440 }
 0x278   : > { %1542 = vxpose.xlu1.b32.cont [2/10] (short) (narrow) %v1500_v43, 8  ;;  %1518 = vxpose.xlu0.b32.cont [10/16] (narrow) %v1492_v62, 8  ;;  %v1495_v51 = vadd.f32 %v2530_v20, %v1441_v46 }
 0x279   : > { %v1459_v44 = vpop.xlane.xlu1 %1458 }
 0x27a   : > { %v1501_v63 = vadd.f32 %v2530_v20, %v1459_v44 }
 0x27b   : > { %v1450_v49 = vpop.xlane.xlu0 %1449 }
 0x27c   : > { %1543 = vxpose.xlu1.b32.cont [3/10] (short) (narrow) %v1501_v63, 8  ;;  %1519 = vxpose.xlu0.b32.cont [11/16] (narrow) %v1493_v45, 8  ;;  %v1498_v58 = vadd.f32 %v2530_v20, %v1450_v49 }
 0x27d   : > { %v1468_v47 = vpop.xlane.xlu1 %1467 }
 0x27e   : > { %v1504_v54 = vadd.f32 %v2530_v20, %v1468_v47 }
 0x27f   : > { %v1447_v5 = vpop.xlane.xlu0 %1446 }
 0x280   : > { %1544 = vxpose.xlu1.b32.cont [4/10] (short) (narrow) %v1502_v1, 8  ;;  %1520 = vxpose.xlu0.b32.cont [12/16] (narrow) %v1494_v48, 8  ;;  %v1497_v56 = vadd.f32 %v2530_v20, %v1447_v5 }
 0x281   : > { %v1465_v50 = vpop.xlane.xlu1 %1464 }
 0x282   : > { %v1503_v3 = vadd.f32 %v2530_v20, %v1465_v50 }
 0x284   : > { %1545 = vxpose.xlu1.b32.cont [5/10] (short) (narrow) %v1503_v3, 8  ;;  %1521 = vxpose.xlu0.b32.cont [13/16] (narrow) %v1495_v51, 8 }
 0x285   : > { %v1474_v52 = vpop.xlane.xlu1 %1473 }
 0x286   : > { %v1506_v59 = vadd.f32 %v2530_v20, %v1474_v52 }
 0x288   : > { %1546 = vxpose.xlu1.b32.cont [6/10] (short) (narrow) %v1504_v54, 8  ;;  %1522 = vxpose.xlu0.b32.cont [14/16] (narrow) %v1496_v53, 8 }
 0x289   : > { %v1471_v55 = vpop.xlane.xlu1 %1470 }
 0x28a   : > { %v1505_v57 = vadd.f32 %v2530_v20, %v1471_v55 }
 0x28c   : > { %1547 = vxpose.xlu1.b32.cont [7/10] (short) (narrow) %v1505_v57, 8  ;;  %1523 = vxpose.xlu0.b32.cont [15/16] (narrow) %v1497_v56, 8 }
 0x28d   : > { %v1480_v7 = vpop.xlane.xlu1 %1479 }
 0x28e   : > { %v1508_v2 = vadd.f32 %v2530_v20, %v1480_v7 }
 0x290   : > { %1548 = vxpose.xlu1.b32.cont [8/10] (short) (narrow) %v1506_v59, 8  ;;  %1524 = vxpose.xlu0.b32.end [16/16] (narrow) %v1498_v58, 8 }
 0x291   : > { %v1477_v0 = vpop.xlane.xlu1 %1476 }
 0x292   : > { %v1507_v9 = vadd.f32 %v2530_v20, %v1477_v0 }
 0x294   : > { %1549 = vxpose.xlu1.b32.cont [9/10] (short) (narrow) %v1507_v9, 8 }
 0x298   : > { %1550 = vxpose.xlu1.b32.end [10/10] (short) (narrow) %v1508_v2, 8 }
 0x2d0   : > { %v1525_v13 = vpop.trf.xlu0 }
 0x2f0   : > { %v1557_v12 = vpop.trf.xlu1 }
 0x2f1   : > { %v1575_v15 = vcombine.low %v1525_v13, %v1557_v12 }
 0x2f3   : > { %v1582_v16 = vrot.slane %v1575_v15, %v1581_v14 }
 0x2f5   : > { %v1589_v18 = vrot.slane %v1582_v16, %v1581_v14 }
 0x2f7   : > { %1595 = vst.msk [vmem:[%s367_s30] sm:$0x3] %vm1593_vm3, %v1589_v18 }
 0x2f8   : > { %2051 = shalt.err (!%p2048_p3)
}
 0x2f9   : > { %s2052_s26 = scalar_lea.hbm %s1609_s18, 32  ;;  %s2056_s29 = scalar_lea.hbm %s2601_s9, 64 }
 0x2fa   : > { %p2053_p4 = scmp.ne.s32.totalorder %s1609_s18, %s2052_s26  ;;  %p2057_p9 = scmp.lt.s32.totalorder %s1609_s18, %s2601_s9 }
 0x2fb   : > { %p2058_p10 = scmp.lt.s32.totalorder %s2056_s29, %s2052_s26 }
 0x2fc   : > { %p2054_p7 = pnand %p2053_p4, %p2193_p5 }
 0x2fd   : > { %p2059_p11 = por %p2058_p10, %p2057_p9 }
 0x2fe   : > { %p2055_p8 = pneg %p2054_p7 }
 0x300   : > { %p2060_p12 = pnand %p2059_p11, %p2055_p8 }
 0x302   : > { %2063 = shalt.err (!%p2060_p12)
}
 0x303   : > { %1997 = dma.vmem_to_hbm [thread:$0]  (%p2193_p5), %s1612_s10, 32, %s1609_s18, %s1597_s22  }
 0x304 PF: > { %p2003_p13 = scmp.ge.s32.totalorder %s2098_s14, 2  ;;  %s1623_s17 = sand.u32 1, %s2086_s11  }
 0x305   : > { %s1624_s23 = scalar_lea.sflag [#allocation4], %s1623_s17 }
 0x306   : > { %p2000_p0 = pnand %p2003_p13, %p2197_p6 }
 0x308   : > { %p2001_p1 = pneg %p2000_p0 }
 0x30a   : > { %2081 = dma.done.wait (%p2001_p1), %s1624_s23, 32  }
 0x30b   : > { %2083 = vsyncadd (%p2001_p1), %s1624_s23, 4294967264  ;;  %p20_p2 = scmp.ge.s32.totalorder %s2180_s16, 4   ;;  %s2604_s11 = smov %s2090_s12 }
 0x30c   : > { %s2605_s12 = smov %s2094_s13  ;;  %s2606_s13 = smov %s2191_s19 }
 0x30d   : > { %s2607_s14 = smov %s2180_s16  ;;  %22 = sbr.rel (!%p20_p2) target bundleno = 5 (0x5), region = 94 }
 0x312   :  { %1629 = vsyncpa [#allocation4], 1 }
 0x313   :  { %1631 = vsyncpa [#allocation4 + $0x1], 1 }

</bundles_post_ra>
